<compile_context>
chip_gen: v6e
topology: v6e:2x2x1
jax: 0.10.0
libtpu: 0.0.40
codegen_flags: <defaults>
</compile_context>

<pallas_src>
import jax
import jax.numpy as jnp
from jax.experimental import pallas as pl
from jax.experimental.pallas import tpu as pltpu


def _pick_b_blk(B, N, T, F_in, F_out):
    """Pick how many batches to fold into one grid step.

    Targets >=256 MXU rows per step (v6e/v7x MXU is 256-tall, v5e 128-tall)
    while keeping the double-buffered per-step footprint under ~8 MiB so the
    kernel fits v5e's 16 MiB scoped-VMEM default and v7x's 32 MiB default.
    """
    bytes_in_out = 4 * (2 * N * N + 2 * N * T * F_in + 2 * N * T * F_out)
    bytes_scratch = 4 * N * T * F_in
    per_batch = bytes_in_out + bytes_scratch
    budget = 8 * 1024 * 1024
    cap = max(1, budget // max(per_batch, 1))
    target = max(1, -(-256 // N))            # ceil(256 / N) rows per step
    b_blk = max(1, min(B, cap, target))
    # Shrink to a divisor of B whose output row-block stays 8-sublane aligned.
    while b_blk > 1 and (B % b_blk != 0 or (b_blk * N) % 8 != 0):
        b_blk -= 1
    if b_blk != B and ((b_blk * N) % 8 != 0 or B % b_blk != 0):
        b_blk = B                            # full-array block is always legal
    return b_blk


def cheb_conv_with_sat(x, spatial_attention, cheb, theta, *,
                       b_blk=None, mxu_dtype=jnp.bfloat16):
    """x: (B, T, N, F_in); spatial_attention: (B, N, N); cheb: (N, N);
    theta: (F_in, F_out).  Returns (B, N, F_out, T) like the PyTorch module."""
    B, T, N, F_in = x.shape
    F_out = theta.shape[1]
    if b_blk is None:
        b_blk = _pick_b_blk(B, N, T, F_in, F_out)
    assert B % b_blk == 0, (B, b_blk)
    out_dtype = x.dtype

    # Cheap permute (0,2,1,3): F_in stays the contiguous minor dim.  The big
    # activation slab is stored in the MXU dtype (bf16 default) to halve its
    # HBM/DMA bytes; cheb / spatial_attention stay f32 so the VPU product is
    # f32 (required on v5e, harmless elsewhere).
    x2d = jnp.transpose(x, (0, 2, 1, 3)).reshape(B, N, T * F_in).astype(mxu_dtype)

    def kernel(cheb_ref, sat_ref, x_ref, theta_ref, o_ref, r_ref):
        # cheb_ref : (N, N)               f32, grid-invariant
        # sat_ref  : (b_blk, N, N)        f32
        # x_ref    : (b_blk, N, T*F_in)   mxu_dtype, columns ordered (t, f)
        # theta_ref: (F_in, F_out)        f32, grid-invariant
        # o_ref    : (b_blk*N, T*F_out)   out_dtype, columns ordered (t, o)
        # r_ref    : (b_blk*N, T*F_in)    f32 VMEM scratch (aggregated slab)
        cheb_m = cheb_ref[...]
        theta_m = theta_ref[...].astype(mxu_dtype)

        # Phase 1 -- graph aggregation: one lane-dense (N,N)@(N,T*F_in) MXU
        # matmul per batch; cheb*attention runs f32 on the VPU, cast for MXU.
        for j in range(b_blk):                       # short static loop (unrolled)
            a_j = (cheb_m * sat_ref[j]).astype(mxu_dtype)
            r_ref[j * N:(j + 1) * N, :] = jnp.dot(
                a_j, x_ref[j].astype(mxu_dtype),
                preferred_element_type=jnp.float32)

        # Phase 2 -- compact Theta contraction on the stacked (b_blk*N, .) slab:
        # T matmuls (b_blk*N, F_in)@(F_in, F_out) against plain Theta (no kron).
        # Columns land in (t, o) order so the block writes back lane-dense.
        for t in range(T):
            r_t = r_ref[:, t * F_in:(t + 1) * F_in].astype(mxu_dtype)
            o_t = jnp.dot(r_t, theta_m, preferred_element_type=jnp.float32)
            o_ref[:, t * F_out:(t + 1) * F_out] = (
                jnp.maximum(o_t, 0.0).astype(out_dtype))

    out2d = pl.pallas_call(
        kernel,
        out_shape=jax.ShapeDtypeStruct((B * N, T * F_out), out_dtype),
        grid_spec=pltpu.PrefetchScalarGridSpec(
            num_scalar_prefetch=0,
            grid=(B // b_blk,),
            in_specs=[
                pl.BlockSpec((N, N), lambda i: (0, 0)),               # cheb (resident)
                pl.BlockSpec((b_blk, N, N), lambda i: (i, 0, 0)),     # spatial attention
                pl.BlockSpec((b_blk, N, T * F_in), lambda i: (i, 0, 0)),  # x slab
                pl.BlockSpec((F_in, F_out), lambda i: (0, 0)),        # Theta (resident)
            ],
            out_specs=pl.BlockSpec((b_blk * N, T * F_out), lambda i: (i, 0)),
            scratch_shapes=[pltpu.VMEM((b_blk * N, T * F_in), jnp.float32)],
        ),
        compiler_params=pltpu.CompilerParams(
            dimension_semantics=("parallel",)),   # batch blocks shard across TCs (v7x)
    )(cheb, spatial_attention, x2d, theta)

    # (B*N, T*F_out) -> (B, N, F_out, T): free reshape + transpose of the small
    # minor (T, F_out) pair only (no full-tensor HBM transpose).
    return out2d.reshape(B, N, T, F_out).transpose(0, 1, 3, 2)


def cheb_conv_with_sat_ref(x, spatial_attention, cheb, theta):
    """Pure-JAX reference matching the PyTorch forward exactly."""
    xp = jnp.transpose(x, (0, 2, 3, 1))                    # (B, N, F_in, T)
    t_k_at = cheb[None, :, :] * spatial_attention          # (B, N, N)
    rhs = jnp.einsum("bnm,bmft->bnft", t_k_at, xp)
    out = jnp.einsum("bnft,fo->bnot", rhs, theta)
    return jax.nn.relu(out)


if __name__ == "__main__":
    key = jax.random.PRNGKey(0)
    k1, k2, k3, k4 = jax.random.split(key, 4)

    B, T, N, F_in, F_out = 4, 8, 16, 4, 8

    x = jax.random.normal(k1, (B, T, N, F_in), dtype=jnp.float32)
    spatial_attention = jax.random.uniform(k2, (B, N, N), dtype=jnp.float32)
    cheb = jax.random.normal(k3, (N, N), dtype=jnp.float32)          # _1stChebNet
    theta = jax.random.normal(k4, (F_in, F_out), dtype=jnp.float32)  # nn.Parameter

    ref = cheb_conv_with_sat_ref(x, spatial_attention, cheb, theta)

    # 1) f32 MXU path, multi-step grid (b_blk=2): exercises the batch-folded
    #    index maps and checks numerics tightly.
    out_f32 = jax.block_until_ready(
        cheb_conv_with_sat(x, spatial_attention, cheb, theta,
                           b_blk=2, mxu_dtype=jnp.float32))
    assert out_f32.shape == (B, N, F_out, T)
    assert jnp.allclose(out_f32, ref, atol=1e-5, rtol=1e-5)

    # 2) Default path: auto batch block + bf16 MXU operands (f32 accumulation).
    #    Looser tolerance accounts for the bf16 input rounding.
    out_bf16 = jax.block_until_ready(
        cheb_conv_with_sat(x, spatial_attention, cheb, theta))
    assert out_bf16.shape == (B, N, F_out, T)
    assert jnp.allclose(out_bf16, ref, atol=1e-1, rtol=5e-2)

    print("KERNEL_OK")
</pallas_src>

<mosaic_0001>
module attributes {stable_mosaic.version = 11 : i64} {
  func.func @kernel(%arg0: i32, %arg1: memref<16x16xf32, #tpu.memory_space<vmem>>, %arg2: memref<2x16x16xf32, #tpu.memory_space<vmem>>, %arg3: memref<2x16x32xf32, #tpu.memory_space<vmem>>, %arg4: memref<4x8xf32, #tpu.memory_space<vmem>>, %arg5: memref<32x64xf32, #tpu.memory_space<vmem>>, %arg6: memref<32x32xf32, #tpu.memory_space<vmem>>) attributes {dimension_semantics = [#tpu.dimension_semantics<parallel>], iteration_bounds = array<i64: 2>, scalar_prefetch = 0 : i64, scratch_operands = 1 : i64, tpu.core_type = #tpu.core_type<tc>, window_params = [{pipeline_mode = #tpu.pipeline_mode<synchronous>, transform_indices = @transform_0, window_bounds = array<i64: 16, 16>}, {transform_indices = @transform_1, window_bounds = array<i64: 2, 16, 16>}, {transform_indices = @transform_2, window_bounds = array<i64: 2, 16, 32>}, {pipeline_mode = #tpu.pipeline_mode<synchronous>, transform_indices = @transform_3, window_bounds = array<i64: 4, 8>}, {transform_indices = @transform_4, window_bounds = array<i64: 32, 64>}]} {
    %c0 = arith.constant 0 : index
    %c0_0 = arith.constant 0 : index
    %0 = vector.load %arg1[%c0, %c0_0] : memref<16x16xf32, #tpu.memory_space<vmem>>, vector<16x16xf32>
    %c0_1 = arith.constant 0 : index
    %c0_2 = arith.constant 0 : index
    %1 = vector.load %arg4[%c0_1, %c0_2] : memref<4x8xf32, #tpu.memory_space<vmem>>, vector<4x8xf32>
    %c0_3 = arith.constant 0 : index
    %c0_4 = arith.constant 0 : index
    %c0_5 = arith.constant 0 : index
    %2 = vector.load %arg2[%c0_3, %c0_4, %c0_5] : memref<2x16x16xf32, #tpu.memory_space<vmem>>, vector<1x16x16xf32>
    %3 = vector.shape_cast %2 : vector<1x16x16xf32> to vector<16x16xf32>
    %4 = arith.mulf %0, %3 : vector<16x16xf32>
    %c0_6 = arith.constant 0 : index
    %c0_7 = arith.constant 0 : index
    %c0_8 = arith.constant 0 : index
    %5 = vector.load %arg3[%c0_6, %c0_7, %c0_8] : memref<2x16x32xf32, #tpu.memory_space<vmem>>, vector<1x16x32xf32>
    %6 = vector.shape_cast %5 : vector<1x16x32xf32> to vector<16x32xf32>
    %cst = arith.constant dense<0.000000e+00> : vector<16x32xf32>
    %7 = tpu.matmul %4, %6, %cst {dimension_numbers = #tpu.dot_dimension_numbers<[1], [0], [0], [1], [0, 0, 1, 1], [], []>} : vector<16x16xf32>, vector<16x32xf32>, vector<16x32xf32> -> vector<16x32xf32>
    %c0_9 = arith.constant 0 : index
    %c0_10 = arith.constant 0 : index
    %8 = vector.load %arg6[%c0_9, %c0_10] : memref<32x32xf32, #tpu.memory_space<vmem>>, vector<16x32xf32>
    tpu.vector_store %arg6[%c0_9, %c0_10], %7 {strides = array<i32>} : memref<32x32xf32, #tpu.memory_space<vmem>>, vector<16x32xf32>,
    %c1 = arith.constant 1 : index
    %c0_11 = arith.constant 0 : index
    %c0_12 = arith.constant 0 : index
    %9 = vector.load %arg2[%c1, %c0_11, %c0_12] : memref<2x16x16xf32, #tpu.memory_space<vmem>>, vector<1x16x16xf32>
    %10 = vector.shape_cast %9 : vector<1x16x16xf32> to vector<16x16xf32>
    %11 = arith.mulf %0, %10 : vector<16x16xf32>
    %c1_13 = arith.constant 1 : index
    %c0_14 = arith.constant 0 : index
    %c0_15 = arith.constant 0 : index
    %12 = vector.load %arg3[%c1_13, %c0_14, %c0_15] : memref<2x16x32xf32, #tpu.memory_space<vmem>>, vector<1x16x32xf32>
    %13 = vector.shape_cast %12 : vector<1x16x32xf32> to vector<16x32xf32>
    %cst_16 = arith.constant dense<0.000000e+00> : vector<16x32xf32>
    %14 = tpu.matmul %11, %13, %cst_16 {dimension_numbers = #tpu.dot_dimension_numbers<[1], [0], [0], [1], [0, 0, 1, 1], [], []>} : vector<16x16xf32>, vector<16x32xf32>, vector<16x32xf32> -> vector<16x32xf32>
    %c16 = arith.constant 16 : index
    %c0_17 = arith.constant 0 : index
    %15 = vector.load %arg6[%c16, %c0_17] : memref<32x32xf32, #tpu.memory_space<vmem>>, vector<16x32xf32>
    tpu.vector_store %arg6[%c16, %c0_17], %14 {strides = array<i32>} : memref<32x32xf32, #tpu.memory_space<vmem>>, vector<16x32xf32>,
    %c0_18 = arith.constant 0 : index
    %c0_19 = arith.constant 0 : index
    %16 = vector.load %arg6[%c0_18, %c0_19] : memref<32x32xf32, #tpu.memory_space<vmem>>, vector<32x4xf32>
    %cst_20 = arith.constant dense<0.000000e+00> : vector<32x8xf32>
    %17 = tpu.matmul %16, %1, %cst_20 {dimension_numbers = #tpu.dot_dimension_numbers<[1], [0], [0], [1], [0, 0, 1, 1], [], []>} : vector<32x4xf32>, vector<4x8xf32>, vector<32x8xf32> -> vector<32x8xf32>
    %cst_21 = arith.constant 0.000000e+00 : f32
    %18 = vector.broadcast %cst_21 : f32 to vector<32x8xf32>
    %19 = arith.maximumf %17, %18 : vector<32x8xf32>
    %c0_22 = arith.constant 0 : index
    %c0_23 = arith.constant 0 : index
    %20 = vector.load %arg5[%c0_22, %c0_23] : memref<32x64xf32, #tpu.memory_space<vmem>>, vector<32x8xf32>
    tpu.vector_store %arg5[%c0_22, %c0_23], %19 {strides = array<i32>} : memref<32x64xf32, #tpu.memory_space<vmem>>, vector<32x8xf32>,
    %c0_24 = arith.constant 0 : index
    %c4 = arith.constant 4 : index
    %21 = vector.load %arg6[%c0_24, %c4] : memref<32x32xf32, #tpu.memory_space<vmem>>, vector<32x4xf32>
    %cst_25 = arith.constant dense<0.000000e+00> : vector<32x8xf32>
    %22 = tpu.matmul %21, %1, %cst_25 {dimension_numbers = #tpu.dot_dimension_numbers<[1], [0], [0], [1], [0, 0, 1, 1], [], []>} : vector<32x4xf32>, vector<4x8xf32>, vector<32x8xf32> -> vector<32x8xf32>
    %cst_26 = arith.constant 0.000000e+00 : f32
    %23 = vector.broadcast %cst_26 : f32 to vector<32x8xf32>
    %24 = arith.maximumf %22, %23 : vector<32x8xf32>
    %c0_27 = arith.constant 0 : index
    %c8 = arith.constant 8 : index
    %25 = vector.load %arg5[%c0_27, %c8] : memref<32x64xf32, #tpu.memory_space<vmem>>, vector<32x8xf32>
    tpu.vector_store %arg5[%c0_27, %c8], %24 {strides = array<i32>} : memref<32x64xf32, #tpu.memory_space<vmem>>, vector<32x8xf32>,
    %c0_28 = arith.constant 0 : index
    %c8_29 = arith.constant 8 : index
    %26 = vector.load %arg6[%c0_28, %c8_29] : memref<32x32xf32, #tpu.memory_space<vmem>>, vector<32x4xf32>
    %cst_30 = arith.constant dense<0.000000e+00> : vector<32x8xf32>
    %27 = tpu.matmul %26, %1, %cst_30 {dimension_numbers = #tpu.dot_dimension_numbers<[1], [0], [0], [1], [0, 0, 1, 1], [], []>} : vector<32x4xf32>, vector<4x8xf32>, vector<32x8xf32> -> vector<32x8xf32>
    %cst_31 = arith.constant 0.000000e+00 : f32
    %28 = vector.broadcast %cst_31 : f32 to vector<32x8xf32>
    %29 = arith.maximumf %27, %28 : vector<32x8xf32>
    %c0_32 = arith.constant 0 : index
    %c16_33 = arith.constant 16 : index
    %30 = vector.load %arg5[%c0_32, %c16_33] : memref<32x64xf32, #tpu.memory_space<vmem>>, vector<32x8xf32>
    tpu.vector_store %arg5[%c0_32, %c16_33], %29 {strides = array<i32>} : memref<32x64xf32, #tpu.memory_space<vmem>>, vector<32x8xf32>,
    %c0_34 = arith.constant 0 : index
    %c12 = arith.constant 12 : index
    %31 = vector.load %arg6[%c0_34, %c12] : memref<32x32xf32, #tpu.memory_space<vmem>>, vector<32x4xf32>
    %cst_35 = arith.constant dense<0.000000e+00> : vector<32x8xf32>
    %32 = tpu.matmul %31, %1, %cst_35 {dimension_numbers = #tpu.dot_dimension_numbers<[1], [0], [0], [1], [0, 0, 1, 1], [], []>} : vector<32x4xf32>, vector<4x8xf32>, vector<32x8xf32> -> vector<32x8xf32>
    %cst_36 = arith.constant 0.000000e+00 : f32
    %33 = vector.broadcast %cst_36 : f32 to vector<32x8xf32>
    %34 = arith.maximumf %32, %33 : vector<32x8xf32>
    %c0_37 = arith.constant 0 : index
    %c24 = arith.constant 24 : index
    %35 = vector.load %arg5[%c0_37, %c24] : memref<32x64xf32, #tpu.memory_space<vmem>>, vector<32x8xf32>
    tpu.vector_store %arg5[%c0_37, %c24], %34 {strides = array<i32>} : memref<32x64xf32, #tpu.memory_space<vmem>>, vector<32x8xf32>,
    %c0_38 = arith.constant 0 : index
    %c16_39 = arith.constant 16 : index
    %36 = vector.load %arg6[%c0_38, %c16_39] : memref<32x32xf32, #tpu.memory_space<vmem>>, vector<32x4xf32>
    %cst_40 = arith.constant dense<0.000000e+00> : vector<32x8xf32>
    %37 = tpu.matmul %36, %1, %cst_40 {dimension_numbers = #tpu.dot_dimension_numbers<[1], [0], [0], [1], [0, 0, 1, 1], [], []>} : vector<32x4xf32>, vector<4x8xf32>, vector<32x8xf32> -> vector<32x8xf32>
    %cst_41 = arith.constant 0.000000e+00 : f32
    %38 = vector.broadcast %cst_41 : f32 to vector<32x8xf32>
    %39 = arith.maximumf %37, %38 : vector<32x8xf32>
    %c0_42 = arith.constant 0 : index
    %c32 = arith.constant 32 : index
    %40 = vector.load %arg5[%c0_42, %c32] : memref<32x64xf32, #tpu.memory_space<vmem>>, vector<32x8xf32>
    tpu.vector_store %arg5[%c0_42, %c32], %39 {strides = array<i32>} : memref<32x64xf32, #tpu.memory_space<vmem>>, vector<32x8xf32>,
    %c0_43 = arith.constant 0 : index
    %c20 = arith.constant 20 : index
    %41 = vector.load %arg6[%c0_43, %c20] : memref<32x32xf32, #tpu.memory_space<vmem>>, vector<32x4xf32>
    %cst_44 = arith.constant dense<0.000000e+00> : vector<32x8xf32>
    %42 = tpu.matmul %41, %1, %cst_44 {dimension_numbers = #tpu.dot_dimension_numbers<[1], [0], [0], [1], [0, 0, 1, 1], [], []>} : vector<32x4xf32>, vector<4x8xf32>, vector<32x8xf32> -> vector<32x8xf32>
    %cst_45 = arith.constant 0.000000e+00 : f32
    %43 = vector.broadcast %cst_45 : f32 to vector<32x8xf32>
    %44 = arith.maximumf %42, %43 : vector<32x8xf32>
    %c0_46 = arith.constant 0 : index
    %c40 = arith.constant 40 : index
    %45 = vector.load %arg5[%c0_46, %c40] : memref<32x64xf32, #tpu.memory_space<vmem>>, vector<32x8xf32>
    tpu.vector_store %arg5[%c0_46, %c40], %44 {strides = array<i32>} : memref<32x64xf32, #tpu.memory_space<vmem>>, vector<32x8xf32>,
    %c0_47 = arith.constant 0 : index
    %c24_48 = arith.constant 24 : index
    %46 = vector.load %arg6[%c0_47, %c24_48] : memref<32x32xf32, #tpu.memory_space<vmem>>, vector<32x4xf32>
    %cst_49 = arith.constant dense<0.000000e+00> : vector<32x8xf32>
    %47 = tpu.matmul %46, %1, %cst_49 {dimension_numbers = #tpu.dot_dimension_numbers<[1], [0], [0], [1], [0, 0, 1, 1], [], []>} : vector<32x4xf32>, vector<4x8xf32>, vector<32x8xf32> -> vector<32x8xf32>
    %cst_50 = arith.constant 0.000000e+00 : f32
    %48 = vector.broadcast %cst_50 : f32 to vector<32x8xf32>
    %49 = arith.maximumf %47, %48 : vector<32x8xf32>
    %c0_51 = arith.constant 0 : index
    %c48 = arith.constant 48 : index
    %50 = vector.load %arg5[%c0_51, %c48] : memref<32x64xf32, #tpu.memory_space<vmem>>, vector<32x8xf32>
    tpu.vector_store %arg5[%c0_51, %c48], %49 {strides = array<i32>} : memref<32x64xf32, #tpu.memory_space<vmem>>, vector<32x8xf32>,
    %c0_52 = arith.constant 0 : index
    %c28 = arith.constant 28 : index
    %51 = vector.load %arg6[%c0_52, %c28] : memref<32x32xf32, #tpu.memory_space<vmem>>, vector<32x4xf32>
    %cst_53 = arith.constant dense<0.000000e+00> : vector<32x8xf32>
    %52 = tpu.matmul %51, %1, %cst_53 {dimension_numbers = #tpu.dot_dimension_numbers<[1], [0], [0], [1], [0, 0, 1, 1], [], []>} : vector<32x4xf32>, vector<4x8xf32>, vector<32x8xf32> -> vector<32x8xf32>
    %cst_54 = arith.constant 0.000000e+00 : f32
    %53 = vector.broadcast %cst_54 : f32 to vector<32x8xf32>
    %54 = arith.maximumf %52, %53 : vector<32x8xf32>
    %c0_55 = arith.constant 0 : index
    %c56 = arith.constant 56 : index
    %55 = vector.load %arg5[%c0_55, %c56] : memref<32x64xf32, #tpu.memory_space<vmem>>, vector<32x8xf32>
    tpu.vector_store %arg5[%c0_55, %c56], %54 {strides = array<i32>} : memref<32x64xf32, #tpu.memory_space<vmem>>, vector<32x8xf32>,
    return
  }
  func.func @transform_0(%arg0: i32) -> (i32, i32) {
    %c0_i32 = arith.constant 0 : i32
    %c0_i32_0 = arith.constant 0 : i32
    %c0_i32_1 = arith.constant 0 : i32
    return %c0_i32, %c0_i32_0 : i32, i32
  }
  func.func @transform_1(%arg0: i32) -> (i32, i32, i32) {
    %c0_i32 = arith.constant 0 : i32
    %c0_i32_0 = arith.constant 0 : i32
    %c0_i32_1 = arith.constant 0 : i32
    return %arg0, %c0_i32, %c0_i32_0 : i32, i32, i32
  }
  func.func @transform_2(%arg0: i32) -> (i32, i32, i32) {
    %c0_i32 = arith.constant 0 : i32
    %c0_i32_0 = arith.constant 0 : i32
    %c0_i32_1 = arith.constant 0 : i32
    return %arg0, %c0_i32, %c0_i32_0 : i32, i32, i32
  }
  func.func @transform_3(%arg0: i32) -> (i32, i32) {
    %c0_i32 = arith.constant 0 : i32
    %c0_i32_0 = arith.constant 0 : i32
    %c0_i32_1 = arith.constant 0 : i32
    return %c0_i32, %c0_i32_0 : i32, i32
  }
  func.func @transform_4(%arg0: i32) -> (i32, i32) {
    %c0_i32 = arith.constant 0 : i32
    %c0_i32_0 = arith.constant 0 : i32
    return %arg0, %c0_i32 : i32, i32
  }
}

</mosaic_0001>

<bundles_post_ra>
// kernel: tpu_custom_call.1
= control target key start
LH: loop header
LB: loop body
LE: loop exit
PB: predicated region body
PF: predicated region fallthrough
CT: control target
= control target key end

     0   :  { %9 = vsyncpa [#allocation4], 0  ;;  %s2460_s0 = inlined_call_operand.hbm [shape: f32[16,16], index: 0, kind: input, shape index: {}]   ;;  %s2461_s1 = inlined_call_operand.hbm [shape: f32[4,16,16], index: 1, kind: input, shape index: {}]   ;;  %s2462_s2 = inlined_call_operand.hbm [shape: f32[4,16,32], index: 2, kind: input, shape index: {}]   ;;  %s2463_s3 = inlined_call_operand.vmem [shape: f32[4,8], index: 3, kind: input, shape index: {}]   ;;  %s2464_s4 = inlined_call_operand.hbm [shape: f32[64,64], index: 4, kind: output, shape index: {}]  }
   0x1   :  { %10 = vsyncpa [#allocation7], 0 }
   0x2   :  { %12 = vsyncpa [#allocation7 + $0x1], 0 }
   0x3   :  { %13 = vsyncpa [#allocation5], 0 }
   0x4   :  { %15 = vsyncpa [#allocation5 + $0x1], 0  ;;  %s2108_s15 = smov 0   ;;  %s2110_s16 = smov 0  }
   0x5   :  { %s2112_s17 = smov 0   ;;  %s2114_s18 = smov 0  }
   0x6 LB: > { %s2129_s19 = sadd.s32 1, %s2060_s18   ;;  %s49_s20 = sadd.s32 1, %s2056_s17  ;;  %s2060_s18 = sphi %s2114_s18, %s2484_s18   ;;  %s2056_s17 = sphi %s2112_s17, %s2483_s17   ;;  %s2052_s16 = sphi %s2110_s16, %s2482_s16   ;;  %s2048_s15 = sphi %s2108_s15, %s2481_s15  }
   0x7   : > { %s46_s21 = ssub.s32 %s2060_s18, %s2129_s19  ;;  %p56_p0 = scmp.ne.s32.totalorder %s2056_s17, %s2052_s16 }
   0x8   : > { %p47_p1 = scmp.eq.s32.totalorder %s46_s21, 0  ;;  %p57_p2 = scmp.eq.s32.totalorder %s2060_s18, 0 }
   0x9   : > { %p1857_p5 = scmp.lt.s32.totalorder %s2060_s18, 2  ;;  %s175_s23 = sand.u32 1, %s2060_s18  }
   0xa   : > { %s2138_s22 = scalar_select %p47_p1, %s2056_s17, %s49_s20  }
   0xb   : > { %p58_p3 = por %p57_p2, %p56_p0  ;;  %s177_s24 = sand.u32 1, %s2056_s17  }
   0xc   : > { %s2147_s25 = sshll.u32 %s177_s24, 5  ;;  %s1701_s26 = sshll.u32 %s2060_s18, 9 }
   0xd   : > { %s2155_s29 = scalar_lea.hbm %s2461_s1, %s1701_s26  ;;  %s179_s30 = scalar_lea.vmem [#allocation6], %s2147_s25 }
   0xe   : > { %s187_s5 = sshll.u32 %s179_s30, 4  ;;  %p2158_p6 = pnand %p1857_p5, %p58_p3  ;;  %s2162_s5 = int_to_ptr.vmem [resolvable:$true] %s187_s5 }
   0xf   : > { %s2164_s7 = scalar_lea.sflag [#allocation7], %s175_s23  ;;  %s1910_s8 = scalar_lea.hbm %s2155_s29, 512 }
  0x10   : > { %p1911_p7 = scmp.ne.s32.totalorder %s2155_s29, %s1910_s8  ;;  %p1912_p8 = pneg %p2158_p6 }
  0x11   : > { %s1915_s11 = scalar_lea.hbm %s2461_s1, 1024  ;;  %p1916_p11 = scmp.lt.s32.totalorder %s2155_s29, %s2461_s1 }
  0x12   : > { %p1913_p9 = pnand %p1912_p8, %p1911_p7  ;;  %p1917_p12 = scmp.lt.s32.totalorder %s1915_s11, %s1910_s8 }
  0x14   : > { %p1914_p10 = pneg %p1913_p9  ;;  %p1918_p13 = por %p1917_p12, %p1916_p11 }
  0x16   : > { %p1919_p1 = pnand %p1918_p13, %p1914_p10 }
  0x18   : > { %1922 = shalt.err (!%p1919_p1)
}
  0x19   : > { %s1923_s14 = scalar_lea.vmem %s2162_s5, 512  ;;  %s2062_s20 = smov [#allocation6]  }
  0x1a   : > { %p1924_p2 = scmp.ne.s32.totalorder %s2162_s5, %s1923_s14  ;;  %s1928_s21 = sshll.u32 %s2062_s20, 4  ;;  %s1929_s21 = int_to_ptr.vmem [resolvable:$false] %s1928_s21 }
  0x1b   : > { %s1930_s23 = scalar_lea.vmem %s1929_s21, 1024  ;;  %p1931_p7 = scmp.lt.s32.totalorder %s2162_s5, %s1929_s21 }
  0x1c   : > { %p1926_p3 = pnand %p1924_p2, %p1912_p8  ;;  %p1932_p9 = scmp.lt.s32.totalorder %s1930_s23, %s1923_s14 }
  0x1e   : > { %p1927_p5 = pneg %p1926_p3  ;;  %p1933_p4 = por %p1932_p9, %p1931_p7 }
  0x20   : > { %p1934_p11 = pnand %p1933_p4, %p1927_p5 }
  0x22   : > { %1937 = shalt.err (!%p1934_p11)
}
  0x23   : > { %s2063_s24 = smov 128   ;;  %s2064_s27 = smov 8  }
  0x24   : > { %1848 = dma.hbm_to_vmem [thread:$0]  (!%p2158_p6), %s2155_s29, 512, %s2162_s5, %s2164_s7, %s2063_s24, %s2063_s24, %s2064_s27  }
  0x25   : > { %s201_s28 = scalar_lea.vmem [#allocation8], %s2147_s25  ;;  %s2196_s8 = sadd.s32 4294967295, %s2060_s18  }
  0x26   : > { %s209_s30 = sshll.u32 %s201_s28, 4  ;;  %s1630_s9 = sadd.s32 4294967294, %s2060_s18   ;;  %s2229_s30 = int_to_ptr.vmem [resolvable:$true] %s209_s30 }
  0x27   : > { %p62_p4 = scmp.ne.s32.totalorder %s2052_s16, %s2048_s15  ;;  %p2465_p10 = scmp.eq.s32.totalorder %s2196_s8, 0 }
  0x28   : > { %p133_p12 = scmp.eq.s32.totalorder %s2196_s8, 1  ;;  %p139_p13 = scmp.eq.s32.totalorder %s1630_s9, 1 }
  0x29   : > { %p2205_p1 = por %p2465_p10, %p62_p4  ;;  %p1631_p2 = scmp.ge.s32.totalorder %s2060_s18, 1 }
  0x2a   : > { %p2213_p3 = por %p133_p12, %p56_p0  ;;  %p2217_p5 = por %p139_p13, %p62_p4 }
  0x2b   : > { %s2469_s10 = scalar_select %p2205_p1, 1, 0 }
  0x2c   : > { %s2470_s25 = scalar_select %p2213_p3, 1, 0 }
  0x2d   : > { %s2471_s29 = scalar_select %p2217_p5, 1, 0 }
  0x2e   : > { %p146_p7 = scmp.lt.s32.totalorder %s2060_s18, 3  ;;  %s2227_s12 = scalar_lea.hbm %s2462_s2, %s1701_s26 }
  0x2f   : > { %s2065_s14 = smov [#allocation3]   ;;  %s1938_s21 = scalar_lea.hbm %s2227_s12, 512 }
  0x30   : > { %p2231_p0 = pnand %p1631_p2, %p146_p7  ;;  %s2235_s20 = sshll.u32 %s2065_s14, 4  ;;  %s159_s20 = int_to_ptr.vmem [resolvable:$true] %s2235_s20 }
  0x31   : > { %p1939_p11 = scmp.ne.s32.totalorder %s2227_s12, %s1938_s21  ;;  %s1943_s28 = scalar_lea.hbm %s2462_s2, 1024 }
  0x32   : > { %p1944_p13 = scmp.lt.s32.totalorder %s2227_s12, %s2462_s2  ;;  %p1945_p2 = scmp.lt.s32.totalorder %s1943_s28, %s1938_s21 }
  0x33   : > { %p1941_p4 = pnand %p1939_p11, %p1912_p8 }
  0x34   : > { %p1946_p7 = por %p1945_p2, %p1944_p13 }
  0x35   : > { %p1942_p12 = pneg %p1941_p4 }
  0x37   : > { %p1947_p10 = pnand %p1946_p7, %p1942_p12 }
  0x39   : > { %1950 = shalt.err (!%p1947_p10)
}
  0x3a   : > { %s1951_s11 = scalar_lea.vmem %s2229_s30, 512  ;;  %s2066_s14 = smov [#allocation8]  }
  0x3b   : > { %p1952_p9 = scmp.ne.s32.totalorder %s2229_s30, %s1951_s11  ;;  %s1956_s26 = sshll.u32 %s2066_s14, 4  ;;  %s1957_s26 = int_to_ptr.vmem [resolvable:$false] %s1956_s26 }
  0x3c   : > { %s1958_s23 = scalar_lea.vmem %s1957_s26, 1024  ;;  %p1959_p5 = scmp.lt.s32.totalorder %s2229_s30, %s1957_s26 }
  0x3d   : > { %p1954_p11 = pnand %p1952_p9, %p1912_p8  ;;  %p1960_p3 = scmp.lt.s32.totalorder %s1958_s23, %s1951_s11 }
  0x3f   : > { %p1955_p4 = pneg %p1954_p11  ;;  %p1961_p1 = por %p1960_p3, %p1959_p5 }
  0x41   : > { %p1962_p13 = pnand %p1961_p1, %p1955_p4 }
  0x43   : > { %1965 = shalt.err (!%p1962_p13)
}
  0x44   : > { %1851 = dma.hbm_to_vmem [thread:$0]  (!%p2158_p6), %s2227_s12, 512, %s2229_s30, %s2164_s7, %s2063_s24, %s2063_s24, %s2064_s27  }
  0x45   : > { %p2473_p8 = scmp.eq.s32.totalorder %s2196_s8, 0  ;;  %p2474_p10 = pneg %p2231_p0 }
  0x46   : > { %s1977_s21 = scalar_lea.vmem %s159_s20, 256  ;;  %p1985_p2 = scmp.lt.s32.totalorder %s159_s20, %s159_s20 }
  0x47   : > { %p1842_p9 = pnand %p2474_p10, %p2473_p8  ;;  %p1978_p1 = scmp.ne.s32.totalorder %s159_s20, %s1977_s21 }
  0x48   : > { %p1986_p7 = scmp.lt.s32.totalorder %s1977_s21, %s1977_s21 }
  0x49   : > { %p1968_p3 = pneg %p1842_p9 }
  0x4a   : > { %p1987_p11 = por %p1986_p7, %p1985_p2 }
  0x4b   : > { %p1980_p5 = pnand %p1978_p1, %p1968_p3 }
  0x4d   : > { %p1981_p12 = pneg %p1980_p5 }
  0x4f   : > { %p1988_p4 = pnand %p1987_p11, %p1981_p12 }
  0x51   : > { %1991 = shalt.err (!%p1988_p4)
}
  0x52   : > { %1844 = dma.hbm_to_vmem [thread:$0]  (!%p1842_p9), %s2460_s0, 256, %s159_s20, [#allocation4], %s2063_s24, %s2063_s24, %s2064_s27  }
  0x53   : > { %221 = sbr.rel (%p2231_p0) target bundleno = 812 (0x32c), region = 36  ;;  %p2475_p6 = scmp.eq.s32.totalorder (!%p2231_p0), %s2196_s8, 0 }
  0x58   : > { %2035 = dma.done.wait (%p2475_p6), [#allocation4], 256   ;;  %p2476_p13 = pmov %p2475_p6 }
  0x59   : > { %s227_s30 = sand.u32 1, %s2196_s8   ;;  %s229_s12 = sand.u32 1, %s2052_s16  }
  0x5a   : > { %2037 = vsyncadd (%p2476_p13), [#allocation4], 4294967040  ;;  %s2287_s28 = sshll.u32 %s229_s12, 5  ;;  %s228_s24 = scalar_lea.sflag [#allocation7], %s227_s30 }
  0x5b   : > { %s231_s27 = scalar_lea.vmem [#allocation6], %s2287_s28  ;;  %p2477_p8 = scmp.ne.s32.totalorder %s2469_s10, 0 }
  0x5d   : > { %2039 = dma.done.wait (%p2477_p8), %s228_s24, 1024  }
  0x5e   : > { %2041 = vsyncadd (%p2477_p8), %s228_s24, 4294966272  ;;  %s240_s13 = scalar_lea.vmem [#allocation8], %s2287_s28  ;;  %v273_v4 = vld [vmem:[#allocation3] sm:$0xff]  ;;  %v276_v5 = vld [vmem:[%s231_s27] sm:$0xff]  ;;  %vm282_vm0 = vcmask 130048   ;;  %vm475_vm1 = vcmask 1043456  }
  0x5f   : > { %v281_v0 = vld [vmem:[%s240_s13 + $0x8] sm:$0xff]  ;;  %v1652_v1 = vld [vmem:[%s240_s13 + $0x18] sm:$0xff]  ;;  %v280_v2 = vld [vmem:[%s240_s13] sm:$0xff]  ;;  %v278_v6 = vmul.f32 %v276_v5, %v273_v4  ;;  %vm364_vm2 = vcmask 261120   ;;  %vm462_vm3 = vcmask 31744   ;;  %s2067_s9 = smov 124  }
  0x60   : > { %1753 = vmatprep.subr.mxu0 %v281_v0  ;;  %1760 = vmatprep.subr.mxu1 %v1652_v1  ;;  %v1651_v3 = vld [vmem:[%s240_s13 + $0x10] sm:$0xff]  ;;  %v274_v8 = vld [vmem:[#allocation3 + $0x8] sm:$0xff]  ;;  %v277_v9 = vld [vmem:[%s231_s27 + $0x8] sm:$0xff]  ;;  %s2068_s5 = smov 120   ;;  %s2069_s11 = smov 116   ;;  %vm568_vm4 = vcmask 64512  }
  0x61   : > { %1754 = vmatpush3.msra.mxu0 %v281_v0  ;;  %1761 = vmatpush3.msra.mxu1 %v1652_v1  ;;  %v1649_v7 = vld [vmem:[%s231_s27 + $0x10] sm:$0xff]  ;;  %v279_v11 = vmul.f32 %v277_v9, %v274_v8  ;;  %v1650_v12 = vld [vmem:[%s231_s27 + $0x18] sm:$0xff]  ;;  %s2070_s14 = smov 112   ;;  %s2071_s26 = smov 108   ;;  %vm702_vm5 = vcmask 130112   ;;  %vm836_vm6 = vcmask 195712  }
  0x62   : > { %1755 = vmatprep.subr.mxu0 %v280_v2  ;;  %1762 = vmatprep.subr.mxu1 %v1651_v3  ;;  %v370_v10 = vmul.f32 %v1649_v7, %v273_v4  ;;  %v371_v13 = vmul.f32 %v1650_v12, %v274_v8  ;;  %v2302_v14 = vld [vmem:[%s2463_s3] sm:$0xf]  ;;  %s2072_s23 = smov 104   ;;  %s2073_s21 = smov 100   ;;  %vm970_vm7 = vcmask 261312   ;;  %vm1104_vm8 = vcmask 326912  }
  0x63   : > { %1756 = vmatpush3.msra.mxu0 %v280_v2  ;;  %1757 = vmatprep.mubr.msk.f32.mxu0 %vm282_vm0, %v278_v6  ;;  %s2369_s6 = scalar_lea.vmem [#allocation9], %s2287_s28  ;;  %s2074_s7 = smov 8   ;;  %vm1238_vm9 = vcmask 392512   ;;  %vm1372_vm10 = vcmask 458112   ;;  %vm1506_vm11 = vcmask 523712  }
  0x64   : > { %1763 = vmatpush3.msra.mxu1 %v1651_v3  ;;  %1764 = vmatprep.mubr.msk.f32.mxu1 %vm282_vm0, %v370_v10  ;;  %s2075_s30 = smov 16   ;;  %s2076_s28 = smov 24  }
  0x65   : > { %1758 = vmatmul.mubr.msk.f32.vlgmr.msra.gmra.mxu0 %vm282_vm0, %v279_v11  ;;  %1765 = vmatmul.mubr.msk.f32.vlgmr.msra.gmra.mxu1 %vm282_vm0, %v371_v13  ;;  %s2077_s24 = smov 32   ;;  %s2078_s27 = smov 40  }
  0x66   : > { %1767 = vmatprep.subr.msk.mxu0 %vm475_vm1, %v2302_v14  ;;  %1775 = vmatprep.subr.msk.mxu1 %vm475_vm1, %v2302_v14  ;;  %s2079_s13 = smov 48   ;;  %s2080_s10 = smov 56  }
  0x67   : > { %1768 = vmatpush3.msk.msra.mxu0 %vm475_vm1, %v2302_v14  ;;  %1776 = vmatpush3.msk.msra.mxu1 %vm475_vm1, %v2302_v14  ;;  %s1704_s20 = sshll.u32 %s2196_s8, 9  ;;  %p2478_p10 = scmp.ne.s32.totalorder %s2470_s25, 0 }
  0x68   : > { %1783 = vmatprep.subr.msk.mxu0 %vm475_vm1, %v2302_v14  ;;  %1791 = vmatprep.subr.msk.mxu1 %vm475_vm1, %v2302_v14 }
 0x125   : > { %v1759_v15 = vpop.f32.mrf.mxu0  ;;  %v1766_v16 = vpop.f32.mrf.mxu1 }
 0x126   : > { %366 = vst.msk [vmem:[#allocation2 + $0x8] sm:$0xff] %vm364_vm2, %v1759_v15  ;;  %457 = vst.msk [vmem:[#allocation2 + $0x18] sm:$0xff] %vm364_vm2, %v1766_v16 }
 0x127   : > { %v355_v17 = vpop.f32.mrf.mxu0  ;;  %v447_v18 = vpop.f32.mrf.mxu1 }
 0x128   : > { %365 = vst.msk [vmem:[#allocation2] sm:$0xff] %vm364_vm2, %v355_v17  ;;  %456 = vst.msk [vmem:[#allocation2 + $0x10] sm:$0xff] %vm364_vm2, %v447_v18 }
 0x12d   : > { %v576_v19 = vld [vmem:[#allocation2 + $0x18] sm:$0xff]  ;;  %v574_v20 = vld [vmem:[#allocation2 + $0x8] sm:$0xff] }
 0x12e   : > { %587 = vrot.lane.b32.xlu1 %v576_v19, %s2067_s9  ;;  %583 = vrot.lane.b32.xlu0 %v574_v20, %s2067_s9 }
 0x12f   : > { %v458_v21 = vld [vmem:[#allocation2] sm:$0xff]  ;;  %v460_v22 = vld [vmem:[#allocation2 + $0x10] sm:$0xff] }
 0x130   : > { %1769 = vmatprep.mubr.msk.f32.mxu0 %vm462_vm3, %v458_v21 }
 0x131   : > { %1770 = vmatmul.mubr.msk.f32.vlgmr.msra.gmra.mxu0 %vm462_vm3, %v574_v20 }
 0x132   : > { %717 = vrot.lane.b32.xlu1 %v574_v20, %s2068_s5  ;;  %581 = vrot.lane.b32.xlu0 %v458_v21, %s2067_s9 }
 0x133   : > { %1772 = vmatprep.mubr.msk.f32.mxu0 %vm462_vm3, %v460_v22  ;;  %1784 = vmatpush3.msk.msra.mxu0 %vm475_vm1, %v2302_v14 }
 0x134   : > { %1799 = vmatprep.subr.msk.mxu0 %vm475_vm1, %v2302_v14 }
 0x135   : > { %1773 = vmatmul.mubr.msk.f32.gmra.mxu0 %vm462_vm3, %v576_v19 }
 0x136   : > { %851 = vrot.lane.b32.xlu1 %v574_v20, %s2069_s11  ;;  %715 = vrot.lane.b32.xlu0 %v458_v21, %s2068_s5 }
 0x13a   : > { %721 = vrot.lane.b32.xlu1 %v576_v19, %s2068_s5  ;;  %849 = vrot.lane.b32.xlu0 %v458_v21, %s2069_s11 }
 0x13e   : > { %855 = vrot.lane.b32.xlu1 %v576_v19, %s2069_s11  ;;  %719 = vrot.lane.b32.xlu0 %v460_v22, %s2068_s5 }
 0x142   : > { %985 = vrot.lane.b32.xlu1 %v574_v20, %s2070_s14  ;;  %853 = vrot.lane.b32.xlu0 %v460_v22, %s2069_s11 }
 0x146   : > { %585 = vrot.lane.b32.xlu1 %v460_v22, %s2067_s9  ;;  %983 = vrot.lane.b32.xlu0 %v458_v21, %s2070_s14  ;;  %s1525_s9 = sshll.u32 %s2369_s6, 4  ;;  %s2413_s9 = int_to_ptr.vmem [resolvable:$true] %s1525_s9 }
 0x147   : > { %s1992_s8 = scalar_lea.vmem %s2413_s9, 512 }
 0x148   : > { %p1993_p0 = scmp.ne.s32.totalorder %s2413_s9, %s1992_s8 }
 0x14a   : > { %1119 = vrot.lane.b32.xlu1 %v574_v20, %s2071_s26  ;;  %1117 = vrot.lane.b32.xlu0 %v458_v21, %s2071_s26  ;;  %p1994_p9 = pnand %p1993_p0, %p2478_p10 }
 0x14c   : > { %p1995_p3 = pneg %p1994_p9 }
 0x14e   : > { %989 = vrot.lane.b32.xlu1 %v576_v19, %s2070_s14  ;;  %987 = vrot.lane.b32.xlu0 %v460_v22, %s2070_s14  ;;  %s2410_s14 = scalar_lea.hbm %s2464_s4, %s1704_s20 }
 0x152   : > { %1123 = vrot.lane.b32.xlu1 %v576_v19, %s2071_s26  ;;  %1121 = vrot.lane.b32.xlu0 %v460_v22, %s2071_s26  ;;  %s2418_s26 = scalar_lea.sflag [#allocation5], %s229_s12 }
 0x156   : > { %1253 = vrot.lane.b32.xlu1 %v574_v20, %s2072_s23  ;;  %1251 = vrot.lane.b32.xlu0 %v458_v21, %s2072_s23 }
 0x15a   : > { %1387 = vrot.lane.b32.xlu1 %v574_v20, %s2073_s21  ;;  %1385 = vrot.lane.b32.xlu0 %v458_v21, %s2073_s21 }
 0x15e   : > { %1257 = vrot.lane.b32.xlu1 %v576_v19, %s2072_s23  ;;  %1255 = vrot.lane.b32.xlu0 %v460_v22, %s2072_s23  ;;  %s2081_s23 = smov [#allocation9]  }
 0x162   : > { %1391 = vrot.lane.b32.xlu1 %v576_v19, %s2073_s21  ;;  %1389 = vrot.lane.b32.xlu0 %v460_v22, %s2073_s21  ;;  %s1996_s21 = sshll.u32 %s2081_s23, 4  ;;  %s1997_s21 = int_to_ptr.vmem [resolvable:$false] %s1996_s21 }
 0x163   : > { %p1999_p1 = scmp.lt.s32.totalorder %s2413_s9, %s1997_s21 }
 0x1a0   : > { %v588_v23 = vpop.permute.xlu1 %587  ;;  %v584_v24 = vpop.permute.xlu0 %583 }
 0x1a4   : > { %v718_v25 = vpop.permute.xlu1 %717  ;;  %v582_v26 = vpop.permute.xlu0 %581 }
 0x1a5   : > { %1777 = vmatprep.mubr.msk.f32.mxu1 %vm462_vm3, %v582_v26 }
 0x1a6   : > { %1778 = vmatmul.mubr.msk.f32.vlgmr.msra.gmra.mxu1 %vm462_vm3, %v584_v24 }
 0x1a7   : > { %1792 = vmatpush3.msk.msra.mxu1 %vm475_vm1, %v2302_v14 }
 0x1a8   : > { %v852_v27 = vpop.permute.xlu1 %851  ;;  %v716_v28 = vpop.permute.xlu0 %715  ;;  %1807 = vmatprep.subr.msk.mxu1 %vm475_vm1, %v2302_v14 }
 0x1a9   : > { %1785 = vmatprep.mubr.msk.f32.mxu0 %vm462_vm3, %v716_v28 }
 0x1aa   : > { %1786 = vmatmul.mubr.msk.f32.vlgmr.msra.gmra.mxu0 %vm462_vm3, %v718_v25 }
 0x1ab   : > { %1800 = vmatpush3.msk.msra.mxu0 %vm475_vm1, %v2302_v14 }
 0x1ac   : > { %v722_v29 = vpop.permute.xlu1 %721  ;;  %v850_v30 = vpop.permute.xlu0 %849  ;;  %1815 = vmatprep.subr.msk.mxu0 %vm475_vm1, %v2302_v14 }
 0x1b0   : > { %v856_v31 = vpop.permute.xlu1 %855  ;;  %v720_v32 = vpop.permute.xlu0 %719 }
 0x1b1   : > { %1788 = vmatprep.mubr.msk.f32.mxu0 %vm462_vm3, %v720_v32 }
 0x1b2   : > { %1789 = vmatmul.mubr.msk.f32.gmra.mxu0 %vm462_vm3, %v722_v29 }
 0x1b4   : > { %v986_v33 = vpop.permute.xlu1 %985  ;;  %v854_v34 = vpop.permute.xlu0 %853 }
 0x1b8   : > { %v586_v35 = vpop.permute.xlu1 %585  ;;  %v984_v36 = vpop.permute.xlu0 %983 }
 0x1b9   : > { %1780 = vmatprep.mubr.msk.f32.mxu1 %vm462_vm3, %v586_v35  ;;  %1801 = vmatprep.mubr.msk.f32.mxu0 %vm462_vm3, %v984_v36 }
 0x1ba   : > { %1781 = vmatmul.mubr.msk.f32.gmra.mxu1 %vm462_vm3, %v588_v23  ;;  %1802 = vmatmul.mubr.msk.f32.vlgmr.msra.gmra.mxu0 %vm462_vm3, %v986_v33 }
 0x1bb   : > { %1793 = vmatprep.mubr.msk.f32.mxu1 %vm462_vm3, %v850_v30  ;;  %1816 = vmatpush3.msk.msra.mxu0 %vm475_vm1, %v2302_v14 }
 0x1bc   : > { %v1120_v37 = vpop.permute.xlu1 %1119  ;;  %v1118_v38 = vpop.permute.xlu0 %1117 }
 0x1be   : > { %1794 = vmatmul.mubr.msk.f32.vlgmr.msra.gmra.mxu1 %vm462_vm3, %v852_v27 }
 0x1bf   : > { %1796 = vmatprep.mubr.msk.f32.mxu1 %vm462_vm3, %v854_v34  ;;  %1808 = vmatpush3.msk.msra.mxu1 %vm475_vm1, %v2302_v14 }
 0x1c0   : > { %v990_v39 = vpop.permute.xlu1 %989  ;;  %v988_v40 = vpop.permute.xlu0 %987  ;;  %1823 = vmatprep.subr.msk.mxu1 %vm475_vm1, %v2302_v14 }
 0x1c1   : > { %1804 = vmatprep.mubr.msk.f32.mxu0 %vm462_vm3, %v988_v40 }
 0x1c2   : > { %1797 = vmatmul.mubr.msk.f32.gmra.mxu1 %vm462_vm3, %v856_v31  ;;  %1805 = vmatmul.mubr.msk.f32.gmra.mxu0 %vm462_vm3, %v990_v39 }
 0x1c3   : > { %1809 = vmatprep.mubr.msk.f32.mxu1 %vm462_vm3, %v1118_v38 }
 0x1c4   : > { %v1124_v41 = vpop.permute.xlu1 %1123  ;;  %v1122_v42 = vpop.permute.xlu0 %1121 }
 0x1c6   : > { %1810 = vmatmul.mubr.msk.f32.vlgmr.msra.gmra.mxu1 %vm462_vm3, %v1120_v37 }
 0x1c7   : > { %1812 = vmatprep.mubr.msk.f32.mxu1 %vm462_vm3, %v1122_v42  ;;  %1824 = vmatpush3.msk.msra.mxu1 %vm475_vm1, %v2302_v14 }
 0x1c8   : > { %v1254_v43 = vpop.permute.xlu1 %1253  ;;  %v1252_v44 = vpop.permute.xlu0 %1251 }
 0x1c9   : > { %1817 = vmatprep.mubr.msk.f32.mxu0 %vm462_vm3, %v1252_v44 }
 0x1ca   : > { %1813 = vmatmul.mubr.msk.f32.gmra.mxu1 %vm462_vm3, %v1124_v41  ;;  %1818 = vmatmul.mubr.msk.f32.vlgmr.msra.gmra.mxu0 %vm462_vm3, %v1254_v43 }
 0x1cc   : > { %v1388_v45 = vpop.permute.xlu1 %1387  ;;  %v1386_v46 = vpop.permute.xlu0 %1385 }
 0x1cd   : > { %1825 = vmatprep.mubr.msk.f32.mxu1 %vm462_vm3, %v1386_v46 }
 0x1ce   : > { %1826 = vmatmul.mubr.msk.f32.vlgmr.msra.gmra.mxu1 %vm462_vm3, %v1388_v45 }
 0x1d0   : > { %v1258_v47 = vpop.permute.xlu1 %1257  ;;  %v1256_v48 = vpop.permute.xlu0 %1255 }
 0x1d1   : > { %1820 = vmatprep.mubr.msk.f32.mxu0 %vm462_vm3, %v1256_v48 }
 0x1d2   : > { %1821 = vmatmul.mubr.msk.f32.gmra.mxu0 %vm462_vm3, %v1258_v47 }
 0x1d4   : > { %v1392_v49 = vpop.permute.xlu1 %1391  ;;  %v1390_v50 = vpop.permute.xlu0 %1389 }
 0x1d5   : > { %1828 = vmatprep.mubr.msk.f32.mxu1 %vm462_vm3, %v1390_v50 }
 0x1d6   : > { %1829 = vmatmul.mubr.msk.f32.gmra.mxu1 %vm462_vm3, %v1392_v49 }
 0x1f1   : > { %v1771_v51 = vpop.f32.mrf.mxu0 }
 0x1f2   : > { %v565_v52 = vmax.f32 %v1771_v51, 0.0 }
 0x1f3   : > { %v545_v53 = vpop.f32.mrf.mxu0 }
 0x1f4   : > { %570 = vst.msk [vmem:[%s2369_s6 + $0x8] sm:$0xff] %vm568_vm4, %v565_v52  ;;  %v564_v54 = vmax.f32 %v545_v53, 0.0 }
 0x1f5   : > { %v1774_v55 = vpop.f32.mrf.mxu0 }
 0x1f6   : > { %569 = vst.msk [vmem:[%s2369_s6] sm:$0xff] %vm568_vm4, %v564_v54  ;;  %v567_v56 = vmax.f32 %v1774_v55, 0.0 }
 0x1f7   : > { %v555_v57 = vpop.f32.mrf.mxu0 }
 0x1f8   : > { %572 = vst.msk [vmem:[%s2369_s6 + $0x18] sm:$0xff] %vm568_vm4, %v567_v56  ;;  %v566_v58 = vmax.f32 %v555_v57, 0.0 }
 0x1fa   : > { %571 = vst.msk [vmem:[%s2369_s6 + $0x10] sm:$0xff] %vm568_vm4, %v566_v58 }
 0x266   : > { %v1779_v59 = vpop.f32.mrf.mxu1 }
 0x267   : > { %v683_v60 = vmax.f32 %v1779_v59, 0.0 }
 0x268   : > { %v663_v61 = vpop.f32.mrf.mxu1 }
 0x269   : > { %v682_v62 = vmax.f32 %v663_v61, 0.0  ;;  %692 = vrot.lane.b32.xlu1 %v683_v60, %s2074_s7 }
 0x26a   : > { %v1787_v63 = vpop.f32.mrf.mxu0 }
 0x26b   : > { %v817_v0 = vmax.f32 %v1787_v63, 0.0  ;;  %690 = vrot.lane.b32.xlu0 %v682_v62, %s2074_s7 }
 0x26c   : > { %v797_v1 = vpop.f32.mrf.mxu0 }
 0x26d   : > { %v816_v2 = vmax.f32 %v797_v1, 0.0  ;;  %826 = vrot.lane.b32.xlu1 %v817_v0, %s2075_s30 }
 0x26f   : > { %824 = vrot.lane.b32.xlu0 %v816_v2, %s2075_s30 }
 0x272   : > { %v1790_v3 = vpop.f32.mrf.mxu0 }
 0x273   : > { %v819_v10 = vmax.f32 %v1790_v3, 0.0 }
 0x274   : > { %v807_v8 = vpop.f32.mrf.mxu0 }
 0x275   : > { %v818_v12 = vmax.f32 %v807_v8, 0.0 }
 0x27a   : > { %v1782_v4 = vpop.f32.mrf.mxu1  ;;  %v1803_v13 = vpop.f32.mrf.mxu0 }
 0x27b   : > { %v685_v5 = vmax.f32 %v1782_v4, 0.0  ;;  %v1085_v18 = vmax.f32 %v1803_v13, 0.0 }
 0x27c   : > { %v673_v6 = vpop.f32.mrf.mxu1  ;;  %v1065_v17 = vpop.f32.mrf.mxu0 }
 0x27d   : > { %v684_v7 = vmax.f32 %v673_v6, 0.0  ;;  %696 = vrot.lane.b32.xlu1 %v685_v5, %s2074_s7  ;;  %v1084_v20 = vmax.f32 %v1065_v17, 0.0 }
 0x27e   : > { %v1795_v9 = vpop.f32.mrf.mxu1 }
 0x27f   : > { %694 = vrot.lane.b32.xlu0 %v684_v7, %s2074_s7  ;;  %v951_v14 = vmax.f32 %v1795_v9, 0.0 }
 0x280   : > { %v931_v11 = vpop.f32.mrf.mxu1 }
 0x281   : > { %830 = vrot.lane.b32.xlu1 %v819_v10, %s2075_s30  ;;  %v950_v16 = vmax.f32 %v931_v11, 0.0 }
 0x282   : > { %v1798_v15 = vpop.f32.mrf.mxu1  ;;  %v1806_v21 = vpop.f32.mrf.mxu0 }
 0x283   : > { %828 = vrot.lane.b32.xlu0 %v818_v12, %s2075_s30  ;;  %v953_v22 = vmax.f32 %v1798_v15, 0.0  ;;  %v1087_v26 = vmax.f32 %v1806_v21, 0.0  ;;  %s1998_s30 = scalar_lea.vmem %s1997_s21, 1024 }
 0x284   : > { %v941_v19 = vpop.f32.mrf.mxu1  ;;  %v1075_v25 = vpop.f32.mrf.mxu0  ;;  %p2000_p5 = scmp.lt.s32.totalorder %s1998_s30, %s1992_s8 }
 0x285   : > { %960 = vrot.lane.b32.xlu1 %v951_v14, %s2076_s28  ;;  %v952_v24 = vmax.f32 %v941_v19, 0.0  ;;  %v1086_v28 = vmax.f32 %v1075_v25, 0.0 }
 0x286   : > { %v1811_v23 = vpop.f32.mrf.mxu1  ;;  %p2001_p12 = por %p2000_p5, %p1999_p1 }
 0x287   : > { %958 = vrot.lane.b32.xlu0 %v950_v16, %s2076_s28  ;;  %v1219_v30 = vmax.f32 %v1811_v23, 0.0 }
 0x288   : > { %v1199_v27 = vpop.f32.mrf.mxu1  ;;  %p2002_p2 = pnand %p2001_p12, %p1995_p3 }
 0x289   : > { %1094 = vrot.lane.b32.xlu1 %v1085_v18, %s2077_s24  ;;  %v1218_v32 = vmax.f32 %v1199_v27, 0.0 }
 0x28a   : > { %v1819_v29 = vpop.f32.mrf.mxu0  ;;  %v1814_v31 = vpop.f32.mrf.mxu1 }
 0x28b   : > { %1092 = vrot.lane.b32.xlu0 %v1084_v20, %s2077_s24  ;;  %v1353_v34 = vmax.f32 %v1819_v29, 0.0  ;;  %v1221_v38 = vmax.f32 %v1814_v31, 0.0 }
 0x28c   : > { %v1333_v33 = vpop.f32.mrf.mxu0  ;;  %v1209_v35 = vpop.f32.mrf.mxu1 }
 0x28d   : > { %964 = vrot.lane.b32.xlu1 %v953_v22, %s2076_s28  ;;  %v1352_v36 = vmax.f32 %v1333_v33, 0.0  ;;  %v1220_v40 = vmax.f32 %v1209_v35, 0.0 }
 0x28e   : > { %v1827_v39 = vpop.f32.mrf.mxu1 }
 0x28f   : > { %962 = vrot.lane.b32.xlu0 %v952_v24, %s2076_s28  ;;  %v1487_v46 = vmax.f32 %v1827_v39, 0.0 }
 0x290   : > { %v1467_v43 = vpop.f32.mrf.mxu1 }
 0x291   : > { %1098 = vrot.lane.b32.xlu1 %v1087_v26, %s2077_s24  ;;  %v1486_v47 = vmax.f32 %v1467_v43, 0.0 }
 0x292   : > { %v1822_v37 = vpop.f32.mrf.mxu0 }
 0x293   : > { %1096 = vrot.lane.b32.xlu0 %v1086_v28, %s2077_s24  ;;  %v1355_v42 = vmax.f32 %v1822_v37, 0.0 }
 0x294   : > { %v1343_v41 = vpop.f32.mrf.mxu0 }
 0x295   : > { %1228 = vrot.lane.b32.xlu1 %v1219_v30, %s2078_s27  ;;  %v1354_v44 = vmax.f32 %v1343_v41, 0.0 }
 0x296   : > { %v1830_v45 = vpop.f32.mrf.mxu1 }
 0x297   : > { %1226 = vrot.lane.b32.xlu0 %v1218_v32, %s2078_s27  ;;  %v1489_v49 = vmax.f32 %v1830_v45, 0.0 }
 0x298   : > { %v1477_v48 = vpop.f32.mrf.mxu1 }
 0x299   : > { %1362 = vrot.lane.b32.xlu1 %v1353_v34, %s2079_s13  ;;  %v1488_v50 = vmax.f32 %v1477_v48, 0.0 }
 0x29b   : > { %1360 = vrot.lane.b32.xlu0 %v1352_v36, %s2079_s13 }
 0x29d   : > { %1232 = vrot.lane.b32.xlu1 %v1221_v38, %s2078_s27 }
 0x29f   : > { %1230 = vrot.lane.b32.xlu0 %v1220_v40, %s2078_s27 }
 0x2a1   : > { %1366 = vrot.lane.b32.xlu1 %v1355_v42, %s2079_s13 }
 0x2a3   : > { %1364 = vrot.lane.b32.xlu0 %v1354_v44, %s2079_s13 }
 0x2a5   : > { %1496 = vrot.lane.b32.xlu1 %v1487_v46, %s2080_s10 }
 0x2a7   : > { %1494 = vrot.lane.b32.xlu0 %v1486_v47, %s2080_s10 }
 0x2a9   : > { %1500 = vrot.lane.b32.xlu1 %v1489_v49, %s2080_s10 }
 0x2ab   : > { %1498 = vrot.lane.b32.xlu0 %v1488_v50, %s2080_s10 }
 0x2db   : > { %v693_v51 = vpop.permute.xlu1 %692 }
 0x2dc   : > { %704 = vst.msk [vmem:[%s2369_s6 + $0x8] sm:$0xff] %vm702_vm5, %v693_v51 }
 0x2dd   : > { %v691_v52 = vpop.permute.xlu0 %690 }
 0x2de   : > { %703 = vst.msk [vmem:[%s2369_s6] sm:$0xff] %vm702_vm5, %v691_v52 }
 0x2df   : > { %v827_v53 = vpop.permute.xlu1 %826 }
 0x2e0   : > { %838 = vst.msk [vmem:[%s2369_s6 + $0x8] sm:$0xff] %vm836_vm6, %v827_v53 }
 0x2e1   : > { %v825_v54 = vpop.permute.xlu0 %824 }
 0x2e2   : > { %837 = vst.msk [vmem:[%s2369_s6] sm:$0xff] %vm836_vm6, %v825_v54 }
 0x2ef   : > { %v697_v55 = vpop.permute.xlu1 %696 }
 0x2f0   : > { %706 = vst.msk [vmem:[%s2369_s6 + $0x18] sm:$0xff] %vm702_vm5, %v697_v55 }
 0x2f1   : > { %v695_v56 = vpop.permute.xlu0 %694 }
 0x2f2   : > { %705 = vst.msk [vmem:[%s2369_s6 + $0x10] sm:$0xff] %vm702_vm5, %v695_v56 }
 0x2f3   : > { %v831_v57 = vpop.permute.xlu1 %830 }
 0x2f4   : > { %840 = vst.msk [vmem:[%s2369_s6 + $0x18] sm:$0xff] %vm836_vm6, %v831_v57 }
 0x2f5   : > { %v829_v58 = vpop.permute.xlu0 %828 }
 0x2f6   : > { %839 = vst.msk [vmem:[%s2369_s6 + $0x10] sm:$0xff] %vm836_vm6, %v829_v58 }
 0x2f7   : > { %v961_v59 = vpop.permute.xlu1 %960 }
 0x2f8   : > { %972 = vst.msk [vmem:[%s2369_s6 + $0x8] sm:$0xff] %vm970_vm7, %v961_v59 }
 0x2f9   : > { %v959_v60 = vpop.permute.xlu0 %958 }
 0x2fa   : > { %971 = vst.msk [vmem:[%s2369_s6] sm:$0xff] %vm970_vm7, %v959_v60 }
 0x2fb   : > { %v1095_v61 = vpop.permute.xlu1 %1094 }
 0x2fc   : > { %1106 = vst.msk [vmem:[%s2369_s6 + $0x8] sm:$0xff] %vm1104_vm8, %v1095_v61 }
 0x2fd   : > { %v1093_v62 = vpop.permute.xlu0 %1092 }
 0x2fe   : > { %1105 = vst.msk [vmem:[%s2369_s6] sm:$0xff] %vm1104_vm8, %v1093_v62 }
 0x2ff   : > { %v965_v63 = vpop.permute.xlu1 %964 }
 0x300   : > { %974 = vst.msk [vmem:[%s2369_s6 + $0x18] sm:$0xff] %vm970_vm7, %v965_v63 }
 0x301   : > { %v963_v0 = vpop.permute.xlu0 %962 }
 0x302   : > { %973 = vst.msk [vmem:[%s2369_s6 + $0x10] sm:$0xff] %vm970_vm7, %v963_v0 }
 0x303   : > { %v1099_v1 = vpop.permute.xlu1 %1098 }
 0x304   : > { %1108 = vst.msk [vmem:[%s2369_s6 + $0x18] sm:$0xff] %vm1104_vm8, %v1099_v1 }
 0x305   : > { %v1097_v2 = vpop.permute.xlu0 %1096 }
 0x306   : > { %1107 = vst.msk [vmem:[%s2369_s6 + $0x10] sm:$0xff] %vm1104_vm8, %v1097_v2 }
 0x307   : > { %v1229_v3 = vpop.permute.xlu1 %1228 }
 0x308   : > { %1240 = vst.msk [vmem:[%s2369_s6 + $0x8] sm:$0xff] %vm1238_vm9, %v1229_v3 }
 0x309   : > { %v1227_v4 = vpop.permute.xlu0 %1226 }
 0x30a   : > { %1239 = vst.msk [vmem:[%s2369_s6] sm:$0xff] %vm1238_vm9, %v1227_v4 }
 0x30b   : > { %v1363_v5 = vpop.permute.xlu1 %1362 }
 0x30c   : > { %1374 = vst.msk [vmem:[%s2369_s6 + $0x8] sm:$0xff] %vm1372_vm10, %v1363_v5 }
 0x30d   : > { %v1361_v6 = vpop.permute.xlu0 %1360 }
 0x30e   : > { %1373 = vst.msk [vmem:[%s2369_s6] sm:$0xff] %vm1372_vm10, %v1361_v6 }
 0x30f   : > { %v1233_v7 = vpop.permute.xlu1 %1232 }
 0x310   : > { %1242 = vst.msk [vmem:[%s2369_s6 + $0x18] sm:$0xff] %vm1238_vm9, %v1233_v7 }
 0x311   : > { %v1231_v8 = vpop.permute.xlu0 %1230 }
 0x312   : > { %1241 = vst.msk [vmem:[%s2369_s6 + $0x10] sm:$0xff] %vm1238_vm9, %v1231_v8 }
 0x313   : > { %v1367_v9 = vpop.permute.xlu1 %1366 }
 0x314   : > { %1376 = vst.msk [vmem:[%s2369_s6 + $0x18] sm:$0xff] %vm1372_vm10, %v1367_v9 }
 0x315   : > { %v1365_v10 = vpop.permute.xlu0 %1364 }
 0x316   : > { %1375 = vst.msk [vmem:[%s2369_s6 + $0x10] sm:$0xff] %vm1372_vm10, %v1365_v10 }
 0x317   : > { %v1497_v11 = vpop.permute.xlu1 %1496 }
 0x318   : > { %1508 = vst.msk [vmem:[%s2369_s6 + $0x8] sm:$0xff] %vm1506_vm11, %v1497_v11 }
 0x319   : > { %v1495_v12 = vpop.permute.xlu0 %1494 }
 0x31a   : > { %1507 = vst.msk [vmem:[%s2369_s6] sm:$0xff] %vm1506_vm11, %v1495_v12 }
 0x31b   : > { %v1501_v13 = vpop.permute.xlu1 %1500 }
 0x31c   : > { %1510 = vst.msk [vmem:[%s2369_s6 + $0x18] sm:$0xff] %vm1506_vm11, %v1501_v13 }
 0x31d   : > { %v1499_v14 = vpop.permute.xlu0 %1498 }
 0x31e   : > { %1509 = vst.msk [vmem:[%s2369_s6 + $0x10] sm:$0xff] %vm1506_vm11, %v1499_v14 }
 0x31f   : > { %2005 = shalt.err (!%p2002_p2)
}
 0x320   : > { %s2006_s12 = scalar_lea.hbm %s2410_s14, 512  ;;  %s2010_s24 = scalar_lea.hbm %s2464_s4, 1024 }
 0x321   : > { %p2007_p7 = scmp.ne.s32.totalorder %s2410_s14, %s2006_s12  ;;  %p2011_p6 = scmp.lt.s32.totalorder %s2410_s14, %s2464_s4 }
 0x322   : > { %p2012_p13 = scmp.lt.s32.totalorder %s2010_s24, %s2006_s12 }
 0x323   : > { %p2008_p11 = pnand %p2007_p7, %p2478_p10 }
 0x324   : > { %p2013_p8 = por %p2012_p13, %p2011_p6 }
 0x325   : > { %p2009_p4 = pneg %p2008_p11 }
 0x327   : > { %p2014_p0 = pnand %p2013_p8, %p2009_p4 }
 0x329   : > { %2017 = shalt.err (!%p2014_p0)
}
 0x32a   : > { %s2082_s10 = smov 128  }
 0x32b   : > { %1839 = dma.vmem_to_hbm [thread:$0]  (%p2478_p10), %s2413_s9, 512, %s2410_s14, %s2418_s26, %s2082_s10, %s2082_s10, %s2074_s7  }
 0x32c PF: > { %s1540_s20 = sand.u32 1, %s2048_s15   ;;  %p2479_p9 = scmp.ne.s32.totalorder %s2471_s29, 0 }
 0x32d   : > { %p2480_p3 = scmp.ge.s32.totalorder %s2060_s18, 2  ;;  %s1541_s5 = scalar_lea.sflag [#allocation5], %s1540_s20 }
 0x32f   : > { %p1853_p1 = pnand %p2480_p3, %p2479_p9 }
 0x331   : > { %p1854_p5 = pneg %p1853_p1 }
 0x333   : > { %2043 = dma.done.wait (%p1854_p5), %s1541_s5, 512  }
 0x334   : > { %2045 = vsyncadd (%p1854_p5), %s1541_s5, 4294966784  ;;  %p18_p12 = scmp.ge.s32.totalorder %s2129_s19, 4   ;;  %s2481_s15 = smov %s2052_s16 }
 0x335   : > { %s2482_s16 = smov %s2056_s17  ;;  %s2483_s17 = smov %s2138_s22 }
 0x336   : > { %s2484_s18 = smov %s2129_s19  ;;  %20 = sbr.rel (!%p18_p12) target bundleno = 6 (0x6), region = 99 }
 0x33b   :  { %1546 = vsyncpa [#allocation4], 1 }
 0x33c   :  { %1548 = vsyncpa [#allocation4 + $0x1], 1 }
 0x33d   :  { %1549 = vsyncpa [#allocation7], 1 }
 0x33e   :  { %1551 = vsyncpa [#allocation7 + $0x1], 1 }
 0x33f   :  { %1552 = vsyncpa [#allocation5], 1 }
 0x340   :  { %1554 = vsyncpa [#allocation5 + $0x1], 1 }

</bundles_post_ra>
